<compile_context>
chip_gen: v5e
topology: v5e:2x2
jax: 0.10.0
libtpu: 0.0.40
codegen_flags: <defaults>
</compile_context>

<pallas_src>
import functools

import jax
import jax.numpy as jnp
from jax.experimental import pallas as pl
from jax.experimental.pallas import tpu as pltpu

EPS = 1e-5


def _pick_cout_block(cout):
    """Largest multiple-of-8 divisor of `cout` giving >= 4 grid blocks (so a
    v7x chip's two TensorCores both get work); graceful fallbacks otherwise."""
    cands = [b for b in range(8, cout + 1, 8) if cout % b == 0]
    if not cands:
        return cout  # grid of 1; full-dim block is always legal
    with_parallelism = [b for b in cands if cout // b >= 4]
    return max(with_parallelism) if with_parallelism else max(cands)


def _conv_bn_relu_kernel(x_ref, w_ref, gb_ref, o_ref, *, inv_n, eps):
    # x_ref:  (Cin,  S)   f32   full activation (resident across the grid)
    # w_ref:  (bc,   Cin) bf16  this grid step's slice of the conv weight
    # gb_ref: (bc,   2)   f32   fused [gamma, beta] for these channels
    # o_ref:  (bc,   S)   f32
    # MXU matmul: bf16 operands (x cast in-kernel), f32 accumulation.
    xb = x_ref[...].astype(jnp.bfloat16)
    y = jnp.dot(w_ref[...], xb, preferred_element_type=jnp.float32)  # (bc, S)

    # Batch statistics per output channel (lane reduction over the true S).
    s1 = jnp.sum(y, axis=1, keepdims=True)        # (bc, 1)
    s2 = jnp.sum(y * y, axis=1, keepdims=True)    # (bc, 1)
    mean = s1 * inv_n
    var = s2 * inv_n - mean * mean                # biased variance (PyTorch train)

    gb = gb_ref[...]
    scale = gb[:, 0:1] * jax.lax.rsqrt(var + eps)  # (bc, 1)
    shift = gb[:, 1:2] - mean * scale              # (bc, 1)

    o_ref[...] = jnp.maximum(y * scale + shift, 0.0)


def prepare_params(w_conv, gamma, beta):
    """One-time parameter prep (hoisted out of the per-call path):
    conv weight (Cout, Cin, 1, 1) -> (Cout, Cin) bf16; gamma/beta fused into a
    single (Cout, 2) f32 array."""
    cout, cin = w_conv.shape[0], w_conv.shape[1]
    w_bf16 = w_conv.reshape(cout, cin).astype(jnp.bfloat16)
    gb = jnp.stack([gamma.astype(jnp.float32), beta.astype(jnp.float32)], axis=1)
    return w_bf16, gb


def conv2d_bn_relu(x_nchw, w_bf16, gb, eps=EPS):
    """x_nchw: (N, Cin, H, W) f32; w_bf16: (Cout, Cin) bf16; gb: (Cout, 2) f32."""
    N, Cin, H, W = x_nchw.shape
    Cout = w_bf16.shape[0]
    S = N * H * W

    # NCHW -> (Cin, N*H*W). For N == 1 (this module) the permute only moves a
    # size-1 axis, so it lowers to a free reshape (no HBM transpose).
    x_cs = jnp.transpose(x_nchw, (1, 0, 2, 3)).reshape(Cin, S)

    bc = _pick_cout_block(Cout)          # 440 -> 88 (5 parallel Cout blocks)
    n_blocks = Cout // bc

    kernel = functools.partial(
        _conv_bn_relu_kernel, inv_n=1.0 / float(S), eps=float(eps))

    cost = pl.CostEstimate(
        flops=2 * Cout * Cin * S + 6 * Cout * S,
        transcendentals=Cout,
        bytes_accessed=(Cin * S * 4            # x (f32 in)
                        + Cout * Cin * 2       # weight (bf16 in)
                        + Cout * 2 * 4         # gamma/beta (f32 in)
                        + Cout * S * 4),       # output (f32 out)
    )

    out = pl.pallas_call(
        kernel,
        out_shape=jax.ShapeDtypeStruct((Cout, S), jnp.float32),
        grid=(n_blocks,),
        in_specs=[
            # Full activation, same block every step -> DMA'd once, resident.
            pl.BlockSpec((Cin, S), lambda i: (0, 0)),
            # Per-step slice of the weight: the dominant DMA, now pipelined.
            pl.BlockSpec((bc, Cin), lambda i: (i, 0)),
            pl.BlockSpec((bc, 2), lambda i: (i, 0)),
        ],
        out_specs=pl.BlockSpec((bc, S), lambda i: (i, 0)),
        compiler_params=pltpu.CompilerParams(
            dimension_semantics=("parallel",)),
        cost_estimate=cost,
    )(x_cs, w_bf16, gb)

    # (Cout, S) -> NCHW (free for N == 1).
    return jnp.transpose(out.reshape(Cout, N, H, W), (1, 0, 2, 3))


def _reference(x_nchw, w_oi, gamma, beta, eps=EPS):
    """Pure-JAX reference with the same bf16 matmul / f32 BN semantics."""
    N, Cin, H, W = x_nchw.shape
    Cout = w_oi.shape[0]
    x_cs = jnp.transpose(x_nchw, (1, 0, 2, 3)).reshape(Cin, N * H * W)
    y = jnp.dot(w_oi.astype(jnp.bfloat16), x_cs.astype(jnp.bfloat16),
                preferred_element_type=jnp.float32)
    mean = jnp.mean(y, axis=1, keepdims=True)
    var = jnp.mean(jnp.square(y - mean), axis=1, keepdims=True)
    out = (y - mean) / jnp.sqrt(var + eps) * gamma[:, None] + beta[:, None]
    out = jnp.maximum(out, 0.0)
    return jnp.transpose(out.reshape(Cout, N, H, W), (1, 0, 2, 3))


if __name__ == "__main__":
    key = jax.random.PRNGKey(0)
    k_x, k_w = jax.random.split(key)

    N, C, Hs, Ws = 1, 440, 7, 7  # matches Conv2d(440, 440, 1x1) on (1,440,7,7)

    x = jax.random.normal(k_x, (N, C, Hs, Ws), dtype=jnp.float32)
    # Conv2d weight (Cout, Cin, 1, 1), deterministic init.
    w = jax.random.normal(k_w, (C, C, 1, 1), dtype=jnp.float32) * (1.0 / jnp.sqrt(C))
    # BatchNorm2d affine params default-init: weight=1, bias=0.
    gamma = jnp.ones((C,), dtype=jnp.float32)
    beta = jnp.zeros((C,), dtype=jnp.float32)

    # One-time parameter prep (hoisted out of the per-call path).
    w_bf16, gb = prepare_params(w, gamma, beta)

    out = conv2d_bn_relu(x, w_bf16, gb)
    jax.block_until_ready(out)

    ref = _reference(x, w.reshape(C, C), gamma, beta)
    assert out.shape == (N, C, Hs, Ws)
    assert bool(jnp.all(jnp.isfinite(out)))
    assert bool(jnp.allclose(out, ref, atol=1e-2, rtol=1e-2))
    print("KERNEL_OK")
</pallas_src>

<mosaic_0001>
module attributes {stable_mosaic.version = 11 : i64} {
  func.func @_conv_bn_relu_kernel(%arg0: i32, %arg1: memref<440x49xf32, #tpu.memory_space<vmem>>, %arg2: memref<88x440xbf16, #tpu.memory_space<vmem>>, %arg3: memref<88x2xf32, #tpu.memory_space<vmem>>, %arg4: memref<88x49xf32, #tpu.memory_space<vmem>>) attributes {dimension_semantics = [#tpu.dimension_semantics<parallel>], iteration_bounds = array<i64: 5>, scalar_prefetch = 0 : i64, scratch_operands = 0 : i64, tpu.core_type = #tpu.core_type<tc>, window_params = [{pipeline_mode = #tpu.pipeline_mode<synchronous>, transform_indices = @transform_0, window_bounds = array<i64: 440, 49>}, {transform_indices = @transform_1, window_bounds = array<i64: 88, 440>}, {transform_indices = @transform_2, window_bounds = array<i64: 88, 2>}, {transform_indices = @transform_3, window_bounds = array<i64: 88, 49>}]} {
    %c0 = arith.constant 0 : index
    %c0_0 = arith.constant 0 : index
    %0 = vector.load %arg1[%c0, %c0_0] : memref<440x49xf32, #tpu.memory_space<vmem>>, vector<440x49xf32>
    %1 = arith.truncf %0 : vector<440x49xf32> to vector<440x49xbf16>
    %c0_1 = arith.constant 0 : index
    %c0_2 = arith.constant 0 : index
    %2 = vector.load %arg2[%c0_1, %c0_2] : memref<88x440xbf16, #tpu.memory_space<vmem>>, vector<88x440xbf16>
    %cst = arith.constant dense<0.000000e+00> : vector<88x49xf32>
    %3 = tpu.matmul %2, %1, %cst {dimension_numbers = #tpu.dot_dimension_numbers<[1], [0], [0], [1], [0, 0, 1, 1], [], []>} : vector<88x440xbf16>, vector<440x49xbf16>, vector<88x49xf32> -> vector<88x49xf32>
    %cst_3 = arith.constant dense<0.000000e+00> : vector<88xf32>
    %4 = vector.multi_reduction <add>, %3, %cst_3 [1] : vector<88x49xf32> to vector<88xf32>
    %5 = vector.shape_cast %4 : vector<88xf32> to vector<88x1xf32>
    %6 = arith.mulf %3, %3 : vector<88x49xf32>
    %cst_4 = arith.constant dense<0.000000e+00> : vector<88xf32>
    %7 = vector.multi_reduction <add>, %6, %cst_4 [1] : vector<88x49xf32> to vector<88xf32>
    %8 = vector.shape_cast %7 : vector<88xf32> to vector<88x1xf32>
    %cst_5 = arith.constant 0.0204081628 : f32
    %9 = vector.broadcast %cst_5 : f32 to vector<88x1xf32>
    %10 = arith.mulf %5, %9 : vector<88x1xf32>
    %cst_6 = arith.constant 0.0204081628 : f32
    %11 = vector.broadcast %cst_6 : f32 to vector<88x1xf32>
    %12 = arith.mulf %8, %11 : vector<88x1xf32>
    %13 = arith.mulf %10, %10 : vector<88x1xf32>
    %14 = arith.subf %12, %13 : vector<88x1xf32>
    %c0_7 = arith.constant 0 : index
    %c0_8 = arith.constant 0 : index
    %15 = vector.load %arg3[%c0_7, %c0_8] : memref<88x2xf32, #tpu.memory_space<vmem>>, vector<88x2xf32>
    %16 = vector.extract_strided_slice %15 {offsets = [0, 0], sizes = [88, 1], strides = [1, 1]} : vector<88x2xf32> to vector<88x1xf32>
    %cst_9 = arith.constant 9.99999974E-6 : f32
    %17 = vector.broadcast %cst_9 : f32 to vector<88x1xf32>
    %18 = arith.addf %14, %17 : vector<88x1xf32>
    %19 = math.rsqrt %18 : vector<88x1xf32>
    %20 = arith.mulf %16, %19 : vector<88x1xf32>
    %21 = vector.extract_strided_slice %15 {offsets = [0, 1], sizes = [88, 1], strides = [1, 1]} : vector<88x2xf32> to vector<88x1xf32>
    %22 = arith.mulf %10, %20 : vector<88x1xf32>
    %23 = arith.subf %21, %22 : vector<88x1xf32>
    %24 = vector.broadcast %20 : vector<88x1xf32> to vector<88x49xf32>
    %25 = arith.mulf %3, %24 : vector<88x49xf32>
    %26 = vector.broadcast %23 : vector<88x1xf32> to vector<88x49xf32>
    %27 = arith.addf %25, %26 : vector<88x49xf32>
    %cst_10 = arith.constant 0.000000e+00 : f32
    %28 = vector.broadcast %cst_10 : f32 to vector<88x49xf32>
    %29 = arith.maximumf %27, %28 : vector<88x49xf32>
    %c0_11 = arith.constant 0 : index
    %c0_12 = arith.constant 0 : index
    %30 = vector.load %arg4[%c0_11, %c0_12] : memref<88x49xf32, #tpu.memory_space<vmem>>, vector<88x49xf32>
    tpu.vector_store %arg4[%c0_11, %c0_12], %29 {strides = array<i32>} : memref<88x49xf32, #tpu.memory_space<vmem>>, vector<88x49xf32>,
    return
  }
  func.func @transform_0(%arg0: i32) -> (i32, i32) {
    %c0_i32 = arith.constant 0 : i32
    %c0_i32_0 = arith.constant 0 : i32
    %c0_i32_1 = arith.constant 0 : i32
    return %c0_i32, %c0_i32_0 : i32, i32
  }
  func.func @transform_1(%arg0: i32) -> (i32, i32) {
    %c0_i32 = arith.constant 0 : i32
    %c0_i32_0 = arith.constant 0 : i32
    return %arg0, %c0_i32 : i32, i32
  }
  func.func @transform_2(%arg0: i32) -> (i32, i32) {
    %c0_i32 = arith.constant 0 : i32
    %c0_i32_0 = arith.constant 0 : i32
    return %arg0, %c0_i32 : i32, i32
  }
  func.func @transform_3(%arg0: i32) -> (i32, i32) {
    %c0_i32 = arith.constant 0 : i32
    %c0_i32_0 = arith.constant 0 : i32
    return %arg0, %c0_i32 : i32, i32
  }
}

</mosaic_0001>

<bundles_post_ra>
// kernel: tpu_custom_call.1
= control target key start
LH: loop header
LB: loop body
LE: loop exit
PB: predicated region body
PF: predicated region fallthrough
CT: control target
= control target key end

     0   :  { %s1329_s12 = smov 0   ;;  %s1798_s0 = inlined_call_operand.vmem [shape: f32[440,49], index: 0, kind: input, shape index: {}]   ;;  %s1799_s1 = inlined_call_operand.vmem [shape: bf16[440,440], index: 1, kind: input, shape index: {}]   ;;  %s1800_s2 = inlined_call_operand.vmem [shape: f32[440,2], index: 2, kind: input, shape index: {}]   ;;  %s1801_s3 = inlined_call_operand.vmem [shape: f32[440,49], index: 3, kind: output, shape index: {}]  }
   0x1 LB: > { %s1141_s13 = sadd.s32 4294967295, %s1304_s12   ;;  %p1145_p0 = scmp.ge.s32.totalorder %s1304_s12, 1  ;;  %s1304_s12 = sphi %s1329_s12, %s13_s12  }
   0x2   : > { %p150_p1 = scmp.lt.s32.totalorder %s1304_s12, 6 }
   0x4   : > { %p151_p2 = pnand %p1145_p0, %p150_p1 }
   0x5   : > { %s1346_s20 = smul.u32 (!%p151_p2), 11, %s1141_s13  ;;  %s1307_s6 = smov (!%p151_p2), 1  }
   0x6   : > { %154 = sbr.rel (%p151_p2) target bundleno = 648 (0x288), region = 32 }
   0x7   : > { %p181_p3 = scmp.lt.s32.totalorder (!%p151_p2), %s1346_s20, 54 }
   0xb   : > { %v214_v0 = vld [vmem:[%s1798_s0 + $0x70] sm:$0xff]  ;;  %v215_v1 = vld [vmem:[%s1798_s0 + $0x78] sm:$0xff]  ;;  %v212_v9 = vld [vmem:[%s1798_s0 + $0x60] sm:$0xff]  ;;  %vm432_vm0 = vcmask 1043456   ;;  %s1803_s20 = smov (!%p181_p3, %s1346_s20), 54  ;;  %vm413_vm1 = vcmask 457728  }
   0xc   : > { %v230_v2 = vld [vmem:[%s1798_s0 + $0xf0] sm:$0xff]  ;;  %v262_v3 = vpack.c.bf16 %v215_v1, %v214_v0  ;;  %v231_v4 = vld [vmem:[%s1798_s0 + $0xf8] sm:$0xff]  ;;  %v213_v10 = vld [vmem:[%s1798_s0 + $0x68] sm:$0xff]  ;;  %s1238_s29 = sshll.u32 %s1803_s20, 4  ;;  %vm588_vm2 = vcmask 400384  }
   0xd   : > { %v246_v5 = vld [vmem:[%s1798_s0 + $0x170] sm:$0xff]  ;;  %v247_v6 = vld [vmem:[%s1798_s0 + $0x178] sm:$0xff]  ;;  %v270_v7 = vpack.c.bf16 %v231_v4, %v230_v2  ;;  %v228_v11 = vld [vmem:[%s1798_s0 + $0xe0] sm:$0xff]  ;;  %v261_v12 = vpack.c.bf16 %v213_v10, %v212_v9  ;;  %s1460_s16 = scalar_lea.vmem %s1799_s1, %s1238_s29 }
   0xe   : > { %v278_v8 = vpack.c.bf16 %v247_v6, %v246_v5  ;;  %436 = vmatpush.bf16.msra.mxu0 %v262_v3  ;;  %v229_v13 = vld [vmem:[%s1798_s0 + $0xe8] sm:$0xff]  ;;  %v244_v14 = vld [vmem:[%s1798_s0 + $0x160] sm:$0xff]  ;;  %v210_v18 = vld [vmem:[%s1798_s0 + $0x50] sm:$0xff] }
   0xf   : > { %v245_v15 = vld [vmem:[%s1798_s0 + $0x168] sm:$0xff]  ;;  %474 = vmatpush.bf16.msra.mxu1 %v270_v7  ;;  %v269_v16 = vpack.c.bf16 %v229_v13, %v228_v11  ;;  %v211_v19 = vld [vmem:[%s1798_s0 + $0x58] sm:$0xff]  ;;  %v226_v20 = vld [vmem:[%s1798_s0 + $0xd0] sm:$0xff] }
  0x10   : > { %512 = vmatpush.bf16.msra.mxu2 %v278_v8  ;;  %v277_v17 = vpack.c.bf16 %v245_v15, %v244_v14  ;;  %v227_v21 = vld [vmem:[%s1798_s0 + $0xd8] sm:$0xff]  ;;  %v242_v22 = vld [vmem:[%s1798_s0 + $0x150] sm:$0xff]  ;;  %v260_v25 = vpack.c.bf16 %v211_v19, %v210_v18  ;;  %v208_v27 = vld [vmem:[%s1798_s0 + $0x40] sm:$0xff] }
  0x11   : > { %v243_v23 = vld [vmem:[%s1798_s0 + $0x158] sm:$0xff]  ;;  %v254_v24 = vld [vmem:[%s1798_s0 + $0x1b0] sm:$0xff]  ;;  %v209_v28 = vld [vmem:[%s1798_s0 + $0x48] sm:$0xff]  ;;  %v268_v29 = vpack.c.bf16 %v227_v21, %v226_v20 }
  0x12   : > { %437 = vmatpush.bf16.msra.mxu0 %v261_v12  ;;  %v282_v26 = vpack.c.bf16 %v254_v24, %v254_v24  ;;  %v276_v30 = vpack.c.bf16 %v243_v23, %v242_v22  ;;  %v224_v31 = vld [vmem:[%s1798_s0 + $0xc0] sm:$0xff]  ;;  %v253_v33 = vld [vmem:[%s1798_s0 + $0x1a8] sm:$0xff]  ;;  %v259_v39 = vpack.c.bf16 %v209_v28, %v208_v27  ;;  %v250_v40 = vld [vmem:[%s1798_s0 + $0x190] sm:$0xff] }
  0x13   : > { %475 = vmatpush.bf16.msra.mxu1 %v269_v16  ;;  %v252_v32 = vld [vmem:[%s1798_s0 + $0x1a0] sm:$0xff]  ;;  %v225_v35 = vld [vmem:[%s1798_s0 + $0xc8] sm:$0xff]  ;;  %v251_v41 = vld [vmem:[%s1798_s0 + $0x198] sm:$0xff] }
  0x14   : > { %513 = vmatpush.bf16.msra.mxu2 %v277_v17  ;;  %v434_v34 = vsel %vm432_vm0, %v282_v26, 0  ;;  %v240_v36 = vld [vmem:[%s1798_s0 + $0x140] sm:$0xff]  ;;  %v241_v37 = vld [vmem:[%s1798_s0 + $0x148] sm:$0xff]  ;;  %v281_v38 = vpack.c.bf16 %v253_v33, %v252_v32  ;;  %v267_v42 = vpack.c.bf16 %v225_v35, %v224_v31  ;;  %v206_v44 = vld [vmem:[%s1798_s0 + $0x30] sm:$0xff]  ;;  %v280_v50 = vpack.c.bf16 %v251_v41, %v250_v40 }
  0x15   : > { %554 = vmatpush.bf16.msra.mxu3 %v434_v34  ;;  %v275_v43 = vpack.c.bf16 %v241_v37, %v240_v36  ;;  %v207_v45 = vld [vmem:[%s1798_s0 + $0x38] sm:$0xff]  ;;  %v222_v46 = vld [vmem:[%s1798_s0 + $0xb0] sm:$0xff]  ;;  %v248_v52 = vld [vmem:[%s1798_s0 + $0x180] sm:$0xff] }
  0x16   : > { %438 = vmatpush.bf16.msra.mxu0 %v260_v25  ;;  %v223_v47 = vld [vmem:[%s1798_s0 + $0xb8] sm:$0xff]  ;;  %v238_v48 = vld [vmem:[%s1798_s0 + $0x130] sm:$0xff]  ;;  %v258_v51 = vpack.c.bf16 %v207_v45, %v206_v44  ;;  %v249_v53 = vld [vmem:[%s1798_s0 + $0x188] sm:$0xff] }
  0x17   : > { %476 = vmatpush.bf16.msra.mxu1 %v268_v29  ;;  %v239_v49 = vld [vmem:[%s1798_s0 + $0x138] sm:$0xff]  ;;  %v266_v54 = vpack.c.bf16 %v223_v47, %v222_v46  ;;  %v204_v56 = vld [vmem:[%s1798_s0 + $0x20] sm:$0xff]  ;;  %v205_v57 = vld [vmem:[%s1798_s0 + $0x28] sm:$0xff]  ;;  %v279_v62 = vpack.c.bf16 %v249_v53, %v248_v52 }
  0x18   : > { %514 = vmatpush.bf16.msra.mxu2 %v276_v30  ;;  %v274_v55 = vpack.c.bf16 %v239_v49, %v238_v48  ;;  %v220_v58 = vld [vmem:[%s1798_s0 + $0xa0] sm:$0xff]  ;;  %v221_v59 = vld [vmem:[%s1798_s0 + $0xa8] sm:$0xff]  ;;  %v1162_v0 = vld [vmem:[%s1460_s16 + $0x18] sm:$0xf0]  ;;  %v257_v1 = vpack.c.bf16 %v205_v57, %v204_v56 }
  0x19   : > { %555 = vmatpush.bf16.msra.mxu3 %v281_v38  ;;  %v236_v60 = vld [vmem:[%s1798_s0 + $0x120] sm:$0xff]  ;;  %v237_v61 = vld [vmem:[%s1798_s0 + $0x128] sm:$0xff]  ;;  %v265_v2 = vpack.c.bf16 %v221_v59, %v220_v58  ;;  %v202_v4 = vld [vmem:[%s1798_s0 + $0x10] sm:$0xff] }
  0x1a   : > { %439 = vmatpush.bf16.msra.mxu0 %v259_v39  ;;  %v1240_v63 = vld [vmem:[%s1460_s16 + $0xc] sm:$0xf]  ;;  %v273_v3 = vpack.c.bf16 %v237_v61, %v236_v60  ;;  %v203_v5 = vld [vmem:[%s1798_s0 + $0x18] sm:$0xff]  ;;  %v218_v6 = vld [vmem:[%s1798_s0 + $0x90] sm:$0xff] }
  0x1b   : > { %477 = vmatpush.bf16.msra.mxu1 %v267_v42  ;;  %v219_v7 = vld [vmem:[%s1798_s0 + $0x98] sm:$0xff]  ;;  %v234_v8 = vld [vmem:[%s1798_s0 + $0x110] sm:$0xff]  ;;  %v1165_v10 = vor.u32 %v1240_v63, %v1162_v0  ;;  %v256_v11 = vpack.c.bf16 %v203_v5, %v202_v4  ;;  %v200_v14 = vld [vmem:[%s1798_s0] sm:$0xff] }
  0x1c   : > { %515 = vmatpush.bf16.msra.mxu2 %v275_v43  ;;  %v235_v9 = vld [vmem:[%s1798_s0 + $0x118] sm:$0xff]  ;;  %v264_v12 = vpack.c.bf16 %v219_v7, %v218_v6  ;;  %v201_v15 = vld [vmem:[%s1798_s0 + $0x8] sm:$0xff]  ;;  %v216_v16 = vld [vmem:[%s1798_s0 + $0x80] sm:$0xff] }
  0x1d   : > { %556 = vmatpush.bf16.msra.mxu3 %v280_v50  ;;  %v272_v13 = vpack.c.bf16 %v235_v9, %v234_v8  ;;  %v217_v17 = vld [vmem:[%s1798_s0 + $0x88] sm:$0xff]  ;;  %v232_v18 = vld [vmem:[%s1798_s0 + $0x100] sm:$0xff]  ;;  %v255_v20 = vpack.c.bf16 %v201_v15, %v200_v14  ;;  %v1241_v22 = vld [vmem:[%s1460_s16 + $0xc] sm:$0xf0] }
  0x1e   : > { %440 = vmatpush.bf16.msra.mxu0 %v258_v51  ;;  %v233_v19 = vld [vmem:[%s1798_s0 + $0x108] sm:$0xff]  ;;  %v1152_v21 = vld [vmem:[%s1460_s16] sm:$0xf]  ;;  %v1239_v23 = vld [vmem:[%s1460_s16 + $0x4] sm:$0xf]  ;;  %v263_v24 = vpack.c.bf16 %v217_v17, %v216_v16 }
  0x1f   : > { %478 = vmatpush.bf16.msra.mxu1 %v266_v54  ;;  %v271_v25 = vpack.c.bf16 %v233_v19, %v232_v18  ;;  %v1154_v26 = vld [vmem:[%s1460_s16 + $0x10] sm:$0xf0]  ;;  %v1160_v27 = vld [vmem:[%s1460_s16 + $0x8] sm:$0xf]  ;;  %v1242_v28 = vld [vmem:[%s1460_s16 + $0x14] sm:$0xf0]  ;;  %v1153_v29 = vor.u32 %v1241_v22, %v1152_v21 }
  0x20   : > { %516 = vmatpush.bf16.msra.mxu2 %v274_v55  ;;  %v1157_v30 = vor.u32 %v1239_v23, %v1154_v26  ;;  %v1161_v31 = vor.u32 %v1242_v28, %v1160_v27  ;;  %v1244_v32 = vld [vmem:[%s1460_s16 + $0x2c] sm:$0xf]  ;;  %v1178_v33 = vld [vmem:[%s1460_s16 + $0x38] sm:$0xf0]  ;;  %v1168_v35 = vld [vmem:[%s1460_s16 + $0x20] sm:$0xf] }
  0x21   : > { %557 = vmatpush.bf16.msra.mxu3 %v279_v62  ;;  %v1181_v34 = vor.u32 %v1244_v32, %v1178_v33  ;;  %v1245_v36 = vld [vmem:[%s1460_s16 + $0x2c] sm:$0xf0]  ;;  %v1243_v37 = vld [vmem:[%s1460_s16 + $0x24] sm:$0xf]  ;;  %v1170_v38 = vld [vmem:[%s1460_s16 + $0x30] sm:$0xf0] }
  0x22   : > { %441 = vmatpush.bf16.msra.mxu0 %v257_v1  ;;  %v1176_v39 = vld [vmem:[%s1460_s16 + $0x28] sm:$0xf]  ;;  %v1246_v40 = vld [vmem:[%s1460_s16 + $0x34] sm:$0xf0]  ;;  %v1169_v41 = vor.u32 %v1245_v36, %v1168_v35  ;;  %v1173_v42 = vor.u32 %v1243_v37, %v1170_v38  ;;  %v1248_v44 = vld [vmem:[%s1460_s16 + $0x4c] sm:$0xf] }
  0x23   : > { %479 = vmatpush.bf16.msra.mxu1 %v265_v2  ;;  %v1177_v43 = vor.u32 %v1246_v40, %v1176_v39  ;;  %v1194_v45 = vld [vmem:[%s1460_s16 + $0x58] sm:$0xf0]  ;;  %v1184_v47 = vld [vmem:[%s1460_s16 + $0x40] sm:$0xf]  ;;  %v1249_v48 = vld [vmem:[%s1460_s16 + $0x4c] sm:$0xf0] }
  0x24   : > { %517 = vmatpush.bf16.msra.mxu2 %v273_v3  ;;  %1230 = vmatmul.msk.bf16.vlgmr.msra.gmra.mxu3 %vm413_vm1, %v1165_v10  ;;  %v1197_v46 = vor.u32 %v1248_v44, %v1194_v45  ;;  %v1247_v49 = vld [vmem:[%s1460_s16 + $0x44] sm:$0xf]  ;;  %v1186_v50 = vld [vmem:[%s1460_s16 + $0x50] sm:$0xf0]  ;;  %v1192_v51 = vld [vmem:[%s1460_s16 + $0x48] sm:$0xf]  ;;  %v1185_v53 = vor.u32 %v1249_v48, %v1184_v47 }
  0x25   : > { %v1250_v52 = vld [vmem:[%s1460_s16 + $0x54] sm:$0xf0]  ;;  %v1189_v54 = vor.u32 %v1247_v49, %v1186_v50  ;;  %v1252_v56 = vld [vmem:[%s1460_s16 + $0x6c] sm:$0xf]  ;;  %v1210_v57 = vld [vmem:[%s1460_s16 + $0x78] sm:$0xf0] }
  0x26   : > { %442 = vmatpush.bf16.msra.mxu0 %v256_v11  ;;  %v1193_v55 = vor.u32 %v1250_v52, %v1192_v51  ;;  %v1213_v58 = vor.u32 %v1252_v56, %v1210_v57  ;;  %v1200_v59 = vld [vmem:[%s1460_s16 + $0x60] sm:$0xf]  ;;  %v1253_v60 = vld [vmem:[%s1460_s16 + $0x6c] sm:$0xf0]  ;;  %v1251_v61 = vld [vmem:[%s1460_s16 + $0x64] sm:$0xf] }
  0x27   : > { %480 = vmatpush.bf16.msra.mxu1 %v264_v12  ;;  %v1202_v62 = vld [vmem:[%s1460_s16 + $0x70] sm:$0xf0]  ;;  %v1208_v63 = vld [vmem:[%s1460_s16 + $0x68] sm:$0xf]  ;;  %v1254_v0 = vld [vmem:[%s1460_s16 + $0x74] sm:$0xf0]  ;;  %v1201_v1 = vor.u32 %v1253_v60, %v1200_v59 }
  0x28   : > { %518 = vmatpush.bf16.msra.mxu2 %v272_v13  ;;  %v1205_v2 = vor.u32 %v1251_v61, %v1202_v62  ;;  %v1209_v3 = vor.u32 %v1254_v0, %v1208_v63  ;;  %v1256_v4 = vld [vmem:[%s1460_s16 + $0x8c] sm:$0xf]  ;;  %v1226_v5 = vld [vmem:[%s1460_s16 + $0x98] sm:$0xf0]  ;;  %v1216_v7 = vld [vmem:[%s1460_s16 + $0x80] sm:$0xf] }
  0x29   : > { %v1229_v6 = vor.u32 %v1256_v4, %v1226_v5  ;;  %v1257_v8 = vld [vmem:[%s1460_s16 + $0x8c] sm:$0xf0]  ;;  %v1255_v9 = vld [vmem:[%s1460_s16 + $0x84] sm:$0xf]  ;;  %v1218_v10 = vld [vmem:[%s1460_s16 + $0x90] sm:$0xf0] }
  0x2a   : > { %443 = vmatpush.bf16.msra.mxu0 %v255_v20  ;;  %v1224_v11 = vld [vmem:[%s1460_s16 + $0x88] sm:$0xf]  ;;  %v1258_v12 = vld [vmem:[%s1460_s16 + $0x94] sm:$0xf0]  ;;  %v1217_v13 = vor.u32 %v1257_v8, %v1216_v7  ;;  %v1221_v15 = vor.u32 %v1255_v9, %v1218_v10  ;;  %v303_v19 = vld [vmem:[%s1460_s16 + $0xa0] sm:$0xff] }
  0x2b   : > { %481 = vmatpush.bf16.msra.mxu1 %v263_v24  ;;  %v304_v14 = vld [vmem:[%s1460_s16 + $0xa8] sm:$0xff]  ;;  %v1225_v16 = vor.u32 %v1258_v12, %v1224_v11  ;;  %v367_v20 = vunpack.c.l.b16 %v303_v19  ;;  %v368_v21 = vunpack.c.h.b16 %v303_v19  ;;  %s1148_s16 = sshll.u32 %s1803_s20, 3 }
  0x2c   : > { %519 = vmatpush.bf16.msra.mxu2 %v271_v25  ;;  %v370_v17 = vunpack.c.h.b16 %v304_v14  ;;  %v369_v22 = vunpack.c.l.b16 %v304_v14  ;;  %s1653_s5 = scalar_lea.vmem %s1800_s2, %s1148_s16  ;;  %s1761_s9 = scalar_lea.vmem %s1801_s3, %s1148_s16 }
  0x2d   : > { %444 = vmatmul.bf16.vlgmr.msra.gmra.mxu0 %v1153_v29  ;;  %v391_v23 = vpack.c.b16 %v367_v20, %v367_v20  ;;  %v392_v24 = vpack.c.b16 %v368_v21, %v368_v21 }
  0x2e   : > { %482 = vmatmul.bf16.vlgmr.msra.gmra.mxu1 %v1157_v30  ;;  %v394_v18 = vpack.c.b16 %v370_v17, %v370_v17  ;;  %v393_v25 = vpack.c.b16 %v369_v22, %v369_v22 }
  0x2f   : > { %520 = vmatmul.bf16.vlgmr.msra.gmra.mxu2 %v1161_v31 }
  0x34   : > { %1231 = vmatmul.msk.bf16.gmra.mxu3 %vm413_vm1, %v1181_v34 }
  0x3d   : > { %449 = vmatmul.bf16.gmra.mxu0 %v1169_v41 }
  0x3e   : > { %487 = vmatmul.bf16.gmra.mxu1 %v1173_v42 }
  0x3f   : > { %525 = vmatmul.bf16.gmra.mxu2 %v1177_v43 }
  0x44   : > { %1232 = vmatmul.msk.bf16.gmra.mxu3 %vm413_vm1, %v1197_v46 }
  0x4d   : > { %454 = vmatmul.bf16.gmra.mxu0 %v1185_v53 }
  0x4e   : > { %492 = vmatmul.bf16.gmra.mxu1 %v1189_v54 }
  0x4f   : > { %530 = vmatmul.bf16.gmra.mxu2 %v1193_v55 }
  0x54   : > { %1233 = vmatmul.msk.bf16.gmra.mxu3 %vm413_vm1, %v1213_v58 }
  0x5d   : > { %459 = vmatmul.bf16.gmra.mxu0 %v1201_v1 }
  0x5e   : > { %497 = vmatmul.bf16.gmra.mxu1 %v1205_v2 }
  0x5f   : > { %535 = vmatmul.bf16.gmra.mxu2 %v1209_v3 }
  0x64   : > { %1234 = vmatmul.msk.bf16.gmra.mxu3 %vm413_vm1, %v1229_v6 }
  0x6d   : > { %464 = vmatmul.bf16.gmra.mxu0 %v1217_v13 }
  0x6e   : > { %502 = vmatmul.bf16.gmra.mxu1 %v1221_v15 }
  0x6f   : > { %540 = vmatmul.bf16.gmra.mxu2 %v1225_v16 }
  0x74   : > { %1235 = vmatmul.msk.bf16.gmra.mxu3 %vm413_vm1, %v394_v18 }
  0x7d   : > { %469 = vmatmul.bf16.gmra.mxu0 %v391_v23 }
  0x7e   : > { %507 = vmatmul.bf16.gmra.mxu1 %v392_v24 }
  0x7f   : > { %545 = vmatmul.bf16.gmra.mxu2 %v393_v25 }
  0xa7   : > { %v559_v26 = vpop.f32.mrf.mxu3 }
  0xaa   : > { %v445_v27 = vpop.f32.mrf.mxu0 }
  0xab   : > { %v483_v28 = vpop.f32.mrf.mxu1 }
  0xac   : > { %v484_v29 = vadd.f32 %v483_v28, %v445_v27 }
  0xaf   : > { %v561_v30 = vpop.f32.mrf.mxu3 }
  0xb2   : > { %v521_v31 = vpop.f32.mrf.mxu2  ;;  %v447_v33 = vpop.f32.mrf.mxu0 }
  0xb3   : > { %v522_v32 = vadd.f32 %v521_v31, %v484_v29  ;;  %v485_v34 = vpop.f32.mrf.mxu1 }
  0xb4   : > { %v486_v39 = vadd.f32 %v485_v34, %v447_v33 }
  0xb5   : > { %v1564_v35 = vadd.f32 %v559_v26, %v522_v32 }
  0xb7   : > { %v589_v36 = vsel %vm588_vm2, %v1564_v35, 0.0  ;;  %v622_v37 = vmul.f32 %v1564_v35, %v1564_v35  ;;  %v564_v38 = vpop.f32.mrf.mxu3 }
  0xb8   : > { %590 = vadd.xlane.f32.xlu0 %v589_v36 }
  0xb9   : > { %v633_v40 = vsel %vm588_vm2, %v622_v37, 0.0 }
  0xba   : > { %v523_v41 = vpop.f32.mrf.mxu2  ;;  %634 = vadd.xlane.f32.xlu2 %v633_v40  ;;  %v450_v43 = vpop.f32.mrf.mxu0 }
  0xbb   : > { %v524_v42 = vadd.f32 %v523_v41, %v486_v39  ;;  %v488_v44 = vpop.f32.mrf.mxu1 }
  0xbc   : > { %v489_v46 = vadd.f32 %v488_v44, %v450_v43 }
  0xbd   : > { %v1571_v45 = vadd.f32 %v561_v30, %v524_v42 }
  0xbf   : > { %v592_v47 = vsel %vm588_vm2, %v1571_v45, 0.0  ;;  %v566_v48 = vpop.f32.mrf.mxu3  ;;  %v623_v52 = vmul.f32 %v1571_v45, %v1571_v45 }
  0xc0   : > { %593 = vadd.xlane.f32.xlu0 %v592_v47 }
  0xc1   : > { %v636_v56 = vsel %vm588_vm2, %v623_v52, 0.0 }
  0xc2   : > { %v526_v49 = vpop.f32.mrf.mxu2  ;;  %v452_v51 = vpop.f32.mrf.mxu0 }
  0xc3   : > { %v527_v50 = vadd.f32 %v526_v49, %v489_v46  ;;  %v490_v53 = vpop.f32.mrf.mxu1 }
  0xc4   : > { %v491_v58 = vadd.f32 %v490_v53, %v452_v51 }
  0xc5   : > { %v1577_v54 = vadd.f32 %v564_v38, %v527_v50 }
  0xc7   : > { %v595_v55 = vsel %vm588_vm2, %v1577_v54, 0.0  ;;  %v569_v57 = vpop.f32.mrf.mxu3  ;;  %v624_v62 = vmul.f32 %v1577_v54, %v1577_v54 }
  0xc8   : > { %596 = vadd.xlane.f32.xlu1 %v595_v55  ;;  %637 = vadd.xlane.f32.xlu0 %v636_v56 }
  0xc9   : > { %v639_v2 = vsel %vm588_vm2, %v624_v62, 0.0 }
  0xca   : > { %v528_v59 = vpop.f32.mrf.mxu2  ;;  %v455_v61 = vpop.f32.mrf.mxu0 }
  0xcb   : > { %v529_v60 = vadd.f32 %v528_v59, %v491_v58  ;;  %v493_v63 = vpop.f32.mrf.mxu1 }
  0xcc   : > { %v494_v1 = vadd.f32 %v493_v63, %v455_v61 }
  0xcd   : > { %v1584_v0 = vadd.f32 %v566_v48, %v529_v60 }
  0xcf   : > { %v625_v3 = vmul.f32 %v1584_v0, %v1584_v0  ;;  %v571_v4 = vpop.f32.mrf.mxu3  ;;  %v598_v11 = vsel %vm588_vm2, %v1584_v0, 0.0 }
  0xd0   : > { %640 = vadd.xlane.f32.xlu1 %v639_v2 }
  0xd1   : > { %v642_v5 = vsel %vm588_vm2, %v625_v3, 0.0 }
  0xd2   : > { %v531_v6 = vpop.f32.mrf.mxu2  ;;  %643 = vadd.xlane.f32.xlu2 %v642_v5  ;;  %v457_v8 = vpop.f32.mrf.mxu0 }
  0xd3   : > { %v532_v7 = vadd.f32 %v531_v6, %v494_v1  ;;  %v495_v9 = vpop.f32.mrf.mxu1 }
  0xd4   : > { %v496_v14 = vadd.f32 %v495_v9, %v457_v8 }
  0xd5   : > { %v1590_v10 = vadd.f32 %v569_v57, %v532_v7 }
  0xd7   : > { %v626_v12 = vmul.f32 %v1590_v10, %v1590_v10  ;;  %v574_v13 = vpop.f32.mrf.mxu3  ;;  %v601_v15 = vsel %vm588_vm2, %v1590_v10, 0.0 }
  0xd8   : > { %599 = vadd.xlane.f32.xlu1 %v598_v11 }
  0xd9   : > { %v645_v16 = vsel %vm588_vm2, %v626_v12, 0.0 }
  0xda   : > { %v533_v17 = vpop.f32.mrf.mxu2  ;;  %602 = vadd.xlane.f32.xlu2 %v601_v15  ;;  %646 = vadd.xlane.f32.xlu0 %v645_v16  ;;  %v460_v19 = vpop.f32.mrf.mxu0 }
  0xdb   : > { %v534_v18 = vadd.f32 %v533_v17, %v496_v14  ;;  %v498_v20 = vpop.f32.mrf.mxu1  ;;  %v1306_v17 = vmov 0  }
  0xdc   : > { %v499_v22 = vadd.f32 %v498_v20, %v460_v19  ;;  %1270 = vset.pattern.permute.xlu0 %v1306_v17  ;;  %1271 = vset.pattern.permute.xlu2 %v1306_v17 }
  0xdd   : > { %v1599_v21 = vadd.f32 %v571_v4, %v534_v18  ;;  %1272 = vset.pattern.permute.xlu1 %v1306_v17 }
  0xdf   : > { %v627_v23 = vmul.f32 %v1599_v21, %v1599_v21  ;;  %v576_v24 = vpop.f32.mrf.mxu3  ;;  %v604_v26 = vsel %vm588_vm2, %v1599_v21, 0.0 }
  0xe1   : > { %v648_v25 = vsel %vm588_vm2, %v627_v23, 0.0 }
  0xe2   : > { %v536_v27 = vpop.f32.mrf.mxu2  ;;  %649 = vadd.xlane.f32.xlu1 %v648_v25  ;;  %605 = vadd.xlane.f32.xlu2 %v604_v26  ;;  %v462_v29 = vpop.f32.mrf.mxu0 }
  0xe3   : > { %v537_v28 = vadd.f32 %v536_v27, %v499_v22  ;;  %v500_v30 = vpop.f32.mrf.mxu1 }
  0xe4   : > { %v501_v36 = vadd.f32 %v500_v30, %v462_v29 }
  0xe5   : > { %v1606_v31 = vadd.f32 %v574_v13, %v537_v28 }
  0xe7   : > { %v607_v32 = vsel %vm588_vm2, %v1606_v31, 0.0  ;;  %v628_v33 = vmul.f32 %v1606_v31, %v1606_v31  ;;  %v579_v34 = vpop.f32.mrf.mxu3 }
  0xe8   : > { %608 = vadd.xlane.f32.xlu0 %v607_v32 }
  0xe9   : > { %v651_v37 = vsel %vm588_vm2, %v628_v33, 0.0 }
  0xea   : > { %v538_v38 = vpop.f32.mrf.mxu2  ;;  %652 = vadd.xlane.f32.xlu2 %v651_v37  ;;  %v465_v40 = vpop.f32.mrf.mxu0 }
  0xeb   : > { %v539_v39 = vadd.f32 %v538_v38, %v501_v36  ;;  %v503_v41 = vpop.f32.mrf.mxu1 }
  0xec   : > { %v504_v43 = vadd.f32 %v503_v41, %v465_v40 }
  0xed   : > { %v1613_v42 = vadd.f32 %v576_v24, %v539_v39 }
  0xef   : > { %v610_v44 = vsel %vm588_vm2, %v1613_v42, 0.0  ;;  %v629_v46 = vmul.f32 %v1613_v42, %v1613_v42  ;;  %v581_v47 = vpop.f32.mrf.mxu3 }
  0xf0   : > { %611 = vadd.xlane.f32.xlu1 %v610_v44  ;;  %v1656_v44 = vld [vmem:[%s1653_s5] sm:$0xff] }
  0xf1   : > { %v654_v48 = vsel %vm588_vm2, %v629_v46, 0.0 }
  0xf2   : > { %v541_v49 = vpop.f32.mrf.mxu2  ;;  %655 = vadd.xlane.f32.xlu0 %v654_v48  ;;  %v467_v51 = vpop.f32.mrf.mxu0 }
  0xf3   : > { %v542_v50 = vadd.f32 %v541_v49, %v504_v43  ;;  %v505_v52 = vpop.f32.mrf.mxu1 }
  0xf4   : > { %v506_v58 = vadd.f32 %v505_v52, %v467_v51 }
  0xf5   : > { %v1620_v53 = vadd.f32 %v579_v34, %v542_v50 }
  0xf7   : > { %v613_v55 = vsel %vm588_vm2, %v1620_v53, 0.0  ;;  %v630_v56 = vmul.f32 %v1620_v53, %v1620_v53  ;;  %v584_v57 = vpop.f32.mrf.mxu3 }
  0xf8   : > { %614 = vadd.xlane.f32.xlu2 %v613_v55 }
  0xf9   : > { %v657_v59 = vsel %vm588_vm2, %v630_v56, 0.0 }
  0xfa   : > { %v543_v60 = vpop.f32.mrf.mxu2  ;;  %658 = vadd.xlane.f32.xlu1 %v657_v59  ;;  %v470_v62 = vpop.f32.mrf.mxu0 }
  0xfb   : > { %v544_v61 = vadd.f32 %v543_v60, %v506_v58  ;;  %v508_v63 = vpop.f32.mrf.mxu1 }
  0xfc   : > { %v509_v2 = vadd.f32 %v508_v63, %v470_v62 }
  0xfd   : > { %v1627_v1 = vadd.f32 %v581_v47, %v544_v61 }
  0xff   : > { %v616_v3 = vsel %vm588_vm2, %v1627_v1, 0.0  ;;  %v631_v4 = vmul.f32 %v1627_v1, %v1627_v1  ;;  %v586_v5 = vpop.f32.mrf.mxu3 }
 0x100   : > { %617 = vadd.xlane.f32.xlu0 %v616_v3 }
 0x101   : > { %v660_v6 = vsel %vm588_vm2, %v631_v4, 0.0 }
 0x102   : > { %v546_v7 = vpop.f32.mrf.mxu2  ;;  %661 = vadd.xlane.f32.xlu2 %v660_v6  ;;  %v472_v9 = vpop.f32.mrf.mxu0 }
 0x103   : > { %v547_v8 = vadd.f32 %v546_v7, %v509_v2  ;;  %v510_v11 = vpop.f32.mrf.mxu1 }
 0x105   : > { %v1634_v12 = vadd.f32 %v584_v57, %v547_v8 }
 0x107   : > { %v619_v13 = vsel %vm588_vm2, %v1634_v12, 0.0  ;;  %v632_v14 = vmul.f32 %v1634_v12, %v1634_v12 }
 0x108   : > { %620 = vadd.xlane.f32.xlu1 %v619_v13 }
 0x109   : > { %v663_v15 = vsel %vm588_vm2, %v632_v14, 0.0  ;;  %v1671_v14 = vld [vmem:[%s1653_s5 + $0x8] sm:$0xff] }
 0x10a   : > { %v548_v16 = vpop.f32.mrf.mxu2  ;;  %664 = vadd.xlane.f32.xlu0 %v663_v15 }
 0x12b   : > { %v591_v18 = vpop.xlane.xlu0 %590 }
 0x12c   : > { %v666_v19 = vmul.f32 0.020408163, %v591_v18 }
 0x12d   : > { %v635_v20 = vpop.xlane.xlu2 %634 }
 0x12e   : > { %v688_v22 = vmul.f32 %v666_v19, %v666_v19  ;;  %v677_v23 = vmul.f32 0.020408163, %v635_v20 }
 0x130   : > { %v699_v24 = vsub.f32 %v677_v23, %v688_v22 }
 0x132   : > { %v721_v25 = vadd.f32 1e-05, %v699_v24 }
 0x133   : > { %v594_v26 = vpop.xlane.xlu0 %593 }
 0x134   : > { %1276 = vrsqrt.f32 %v721_v25  ;;  %v1641_v27 = vmul.f32 0.020408163, %v594_v26  ;;  %vm738_vm4 = vweird.f32 %v721_v25 }
 0x136   : > { %v689_v33 = vmul.f32 %v1641_v27, %v1641_v27 }
 0x13a   : > { %v1277_v28 = vpop.eup %1276 }
 0x13b   : > { %v733_v29 = vmul.f32 %v1277_v28, %v721_v25  ;;  %v597_v30 = vpop.xlane.xlu1 %596  ;;  %v638_v32 = vpop.xlane.xlu0 %637  ;;  %vm739_vm3 = vweird.f32 %v1277_v28 }
 0x13c   : > { %v678_v34 = vmul.f32 0.020408163, %v638_v32  ;;  %v1646_v39 = vmul.f32 0.020408163, %v597_v30  ;;  %vm740_vm5 = vmor %vm738_vm4, %vm739_vm3  ;;  %v1679_v32 = vld [vmem:[%s1653_s5 + $0x10] sm:$0xff] }
 0x13d   : > { %v734_v36 = vmul.f32 %v1277_v28, %v733_v29 }
 0x13e   : > { %v700_v37 = vsub.f32 %v678_v34, %v689_v33  ;;  %v690_v47 = vmul.f32 %v1646_v39, %v1646_v39 }
 0x13f   : > { %v735_v38 = vmul.f32 0.5, %v734_v36 }
 0x140   : > { %v722_v40 = vadd.f32 1e-05, %v700_v37 }
 0x141   : > { %v736_v41 = vsub.f32 1.5, %v735_v38 }
 0x142   : > { %1278 = vrsqrt.f32 %v722_v40  ;;  %vm748_vm7 = vweird.f32 %v722_v40 }
 0x143   : > { %v641_v43 = vpop.xlane.xlu1 %640  ;;  %v737_v46 = vmul.f32 %v1277_v28, %v736_v41 }
 0x144   : > { %v679_v48 = vmul.f32 0.020408163, %v641_v43 }
 0x145   : > { %v644_v49 = vpop.xlane.xlu2 %643  ;;  %v741_v50 = vsel %vm740_vm5, %v1277_v28, %v737_v46 }
 0x146   : > { %v701_v51 = vsub.f32 %v679_v48, %v690_v47  ;;  %v842_v52 = vmul.f32 %v741_v50, %v1656_v44  ;;  %v680_v3 = vmul.f32 0.020408163, %v644_v49 }
 0x148   : > { %v1279_v55 = vpop.eup %1278  ;;  %v723_v56 = vadd.f32 1e-05, %v701_v51  ;;  %921 = vperm.xlu0 %1270, %v842_v52   ;;  %v853_v57 = vmul.f32 %v842_v52, %v666_v19 }
 0x149   : > { %v743_v58 = vmul.f32 %v1279_v55, %v722_v40  ;;  %vm749_vm6 = vweird.f32 %v1279_v55 }
 0x14a   : > { %1280 = vrsqrt.f32 %v723_v56  ;;  %875 = vrot.lane.b32.xlu1 %v853_v57, %s1307_s6  ;;  %vm750_vm8 = vmor %vm748_vm7, %vm749_vm6  ;;  %vm758_vm10 = vweird.f32 %v723_v56 }
 0x14b   : > { %v744_v59 = vmul.f32 %v1279_v55, %v743_v58  ;;  %v600_v60 = vpop.xlane.xlu1 %599 }
 0x14c   : > { %v1662_v61 = vmul.f32 0.020408163, %v600_v60 }
 0x14d   : > { %v745_v62 = vmul.f32 0.5, %v744_v59  ;;  %v603_v63 = vpop.xlane.xlu2 %602  ;;  %v647_v2 = vpop.xlane.xlu0 %646 }
 0x14e   : > { %v691_v4 = vmul.f32 %v1662_v61, %v1662_v61  ;;  %v1666_v5 = vmul.f32 0.020408163, %v603_v63  ;;  %v681_v11 = vmul.f32 0.020408163, %v647_v2  ;;  %v1691_v63 = vld [vmem:[%s1653_s5 + $0x18] sm:$0xff] }
 0x14f   : > { %v746_v6 = vsub.f32 1.5, %v745_v62 }
 0x150   : > { %v1281_v7 = vpop.eup %1280  ;;  %v702_v8 = vsub.f32 %v680_v3, %v691_v4  ;;  %v692_v9 = vmul.f32 %v1666_v5, %v1666_v5 }
 0x151   : > { %v753_v13 = vmul.f32 %v1281_v7, %v723_v56  ;;  %v747_v15 = vmul.f32 %v1279_v55, %v746_v6  ;;  %vm759_vm9 = vweird.f32 %v1281_v7 }
 0x152   : > { %v724_v16 = vadd.f32 1e-05, %v702_v8  ;;  %v703_v17 = vsub.f32 %v681_v11, %v692_v9  ;;  %vm760_vm11 = vmor %vm758_vm10, %vm759_vm9  ;;  %v1696_v11 = vld [vmem:[%s1653_s5 + $0x20] sm:$0xff] }
 0x153   : > { %v754_v18 = vmul.f32 %v1281_v7, %v753_v13  ;;  %v751_v19 = vsel %vm750_vm8, %v1279_v55, %v747_v15 }
 0x154   : > { %1282 = vrsqrt.f32 %v724_v16  ;;  %v725_v20 = vadd.f32 1e-05, %v703_v17  ;;  %v843_v22 = vmul.f32 %v751_v19, %v1671_v14  ;;  %vm768_vm13 = vweird.f32 %v724_v16 }
 0x155   : > { %v755_v23 = vmul.f32 0.5, %v754_v18  ;;  %v650_v24 = vpop.xlane.xlu1 %649  ;;  %v606_v25 = vpop.xlane.xlu2 %605 }
 0x156   : > { %1284 = vrsqrt.f32 %v725_v20  ;;  %v1674_v26 = vmul.f32 0.020408163, %v606_v25  ;;  %926 = vperm.xlu2 %1271, %v843_v22   ;;  %v682_v29 = vmul.f32 0.020408163, %v650_v24  ;;  %v854_v48 = vmul.f32 %v843_v22, %v1641_v27 }
 0x157   : > { %v756_v28 = vsub.f32 1.5, %v755_v23  ;;  %vm778_vm0 = vweird.f32 %v725_v20 }
 0x158   : > { %v693_v30 = vmul.f32 %v1674_v26, %v1674_v26 }
 0x159   : > { %v757_v33 = vmul.f32 %v1281_v7, %v756_v28 }
 0x15a   : > { %v1283_v34 = vpop.eup %1282  ;;  %v704_v36 = vsub.f32 %v682_v29, %v693_v30 }
 0x15b   : > { %v763_v37 = vmul.f32 %v1283_v34, %v724_v16  ;;  %v609_v38 = vpop.xlane.xlu0 %608  ;;  %v761_v40 = vsel %vm760_vm11, %v1281_v7, %v757_v33  ;;  %vm769_vm12 = vweird.f32 %v1283_v34 }
 0x15c   : > { %v1285_v41 = vpop.eup %1284  ;;  %v726_v43 = vadd.f32 1e-05, %v704_v36  ;;  %v1681_v46 = vmul.f32 0.020408163, %v609_v38  ;;  %v844_v47 = vmul.f32 %v761_v40, %v1679_v32  ;;  %vm770_vm15 = vmor %vm768_vm13, %vm769_vm12 }
 0x15d   : > { %v764_v49 = vmul.f32 %v1283_v34, %v763_v37  ;;  %v773_v50 = vmul.f32 %v1285_v41, %v725_v20  ;;  %v653_v51 = vpop.xlane.xlu2 %652  ;;  %vm779_vm14 = vweird.f32 %v1285_v41 }
 0x15e   : > { %1286 = vrsqrt.f32 %v726_v43  ;;  %v694_v52 = vmul.f32 %v1681_v46, %v1681_v46  ;;  %v683_v55 = vmul.f32 0.020408163, %v653_v51  ;;  %931 = vperm.xlu1 %1272, %v844_v47   ;;  %877 = vrot.lane.b32.xlu2 %v854_v48, %s1307_s6  ;;  %v855_v58 = vmul.f32 %v844_v47, %v1646_v39  ;;  %vm780_vm1 = vmor %vm778_vm0, %vm779_vm14 }
 0x15f   : > { %v765_v56 = vmul.f32 0.5, %v764_v49  ;;  %v774_v57 = vmul.f32 %v1285_v41, %v773_v50  ;;  %vm788_vm4 = vweird.f32 %v726_v43 }
 0x160   : > { %v705_v59 = vsub.f32 %v683_v55, %v694_v52  ;;  %879 = vrot.lane.b32.xlu0 %v855_v58, %s1307_s6 }
 0x161   : > { %v766_v60 = vsub.f32 1.5, %v765_v56  ;;  %v775_v27 = vmul.f32 0.5, %v774_v57 }
 0x162   : > { %v727_v62 = vadd.f32 1e-05, %v705_v59  ;;  %v1719_v59 = vld [vmem:[%s1653_s5 + $0x30] sm:$0xff] }
 0x163   : > { %v767_v2 = vmul.f32 %v1283_v34, %v766_v60  ;;  %v776_v3 = vsub.f32 1.5, %v775_v27  ;;  %v612_v4 = vpop.xlane.xlu1 %611 }
 0x164   : > { %v1287_v6 = vpop.eup %1286  ;;  %1288 = vrsqrt.f32 %v727_v62  ;;  %v1693_v7 = vmul.f32 0.020408163, %v612_v4  ;;  %vm798_vm7 = vweird.f32 %v727_v62 }
 0x165   : > { %v771_v39 = vsel %vm770_vm15, %v1283_v34, %v767_v2  ;;  %v783_v8 = vmul.f32 %v1287_v6, %v726_v43  ;;  %v656_v9 = vpop.xlane.xlu0 %655  ;;  %v777_v13 = vmul.f32 %v1285_v41, %v776_v3  ;;  %vm789_vm3 = vweird.f32 %v1287_v6  ;;  %v1705_v34 = vld [vmem:[%s1653_s5 + $0x28] sm:$0xff] }
 0x166   : > { %v845_v15 = vmul.f32 %v771_v39, %v1691_v63  ;;  %v695_v16 = vmul.f32 %v1693_v7, %v1693_v7  ;;  %v684_v17 = vmul.f32 0.020408163, %v656_v9  ;;  %vm790_vm5 = vmor %vm788_vm4, %vm789_vm3 }
 0x167   : > { %v784_v18 = vmul.f32 %v1287_v6, %v783_v8  ;;  %v781_v19 = vsel %vm780_vm1, %v1285_v41, %v777_v13 }
 0x168   : > { %v706_v22 = vsub.f32 %v684_v17, %v695_v16  ;;  %936 = vperm.xlu2 %1271, %v845_v15   ;;  %v846_v23 = vmul.f32 %v781_v19, %v1696_v11  ;;  %v856_v40 = vmul.f32 %v845_v15, %v1662_v61 }
 0x169   : > { %v785_v20 = vmul.f32 0.5, %v784_v18  ;;  %v1729_v18 = vld [vmem:[%s1653_s5 + $0x38] sm:$0xff] }
 0x16a   : > { %v1289_v24 = vpop.eup %1288  ;;  %v728_v25 = vadd.f32 1e-05, %v706_v22  ;;  %941 = vperm.xlu1 %1272, %v846_v23   ;;  %v857_v43 = vmul.f32 %v846_v23, %v1666_v5 }
 0x16b   : > { %v786_v28 = vsub.f32 1.5, %v785_v20  ;;  %v793_v29 = vmul.f32 %v1289_v24, %v727_v62  ;;  %v615_v30 = vpop.xlane.xlu2 %614  ;;  %vm799_vm6 = vweird.f32 %v1289_v24 }
 0x16c   : > { %1290 = vrsqrt.f32 %v728_v25  ;;  %v1702_v33 = vmul.f32 0.020408163, %v615_v30  ;;  %vm800_vm8 = vmor %vm798_vm7, %vm799_vm6  ;;  %vm808_vm10 = vweird.f32 %v728_v25 }
 0x16d   : > { %v787_v36 = vmul.f32 %v1287_v6, %v786_v28  ;;  %v794_v37 = vmul.f32 %v1289_v24, %v793_v29  ;;  %v659_v38 = vpop.xlane.xlu1 %658 }
 0x16e   : > { %v696_v41 = vmul.f32 %v1702_v33, %v1702_v33  ;;  %v685_v47 = vmul.f32 0.020408163, %v659_v38 }
 0x16f   : > { %v791_v48 = vsel %vm790_vm5, %v1287_v6, %v787_v36  ;;  %v795_v49 = vmul.f32 0.5, %v794_v37 }
 0x170   : > { %v1711_v50 = vmul.f32 %v791_v48, %v1705_v34  ;;  %v707_v51 = vsub.f32 %v685_v47, %v696_v41  ;;  %881 = vrot.lane.b32.xlu2 %v856_v40, %s1307_s6  ;;  %v1735_v47 = vld [vmem:[%s1653_s5 + $0x40] sm:$0xff] }
 0x171   : > { %v796_v52 = vsub.f32 1.5, %v795_v49 }
 0x172   : > { %v1291_v55 = vpop.eup %1290  ;;  %v858_v61 = vmul.f32 %v1711_v50, %v1674_v26  ;;  %v729_v56 = vadd.f32 1e-05, %v707_v51  ;;  %883 = vrot.lane.b32.xlu1 %v857_v43, %s1307_s6 }
 0x173   : > { %v803_v57 = vmul.f32 %v1291_v55, %v728_v25  ;;  %v618_v58 = vpop.xlane.xlu0 %617  ;;  %v797_v60 = vmul.f32 %v1289_v24, %v796_v52  ;;  %vm809_vm9 = vweird.f32 %v1291_v55 }
 0x174   : > { %1292 = vrsqrt.f32 %v729_v56  ;;  %v675_v27 = vmul.f32 0.020408163, %v618_v58  ;;  %885 = vrot.lane.b32.xlu0 %v858_v61, %s1307_s6  ;;  %vm810_vm11 = vmor %vm808_vm10, %vm809_vm9  ;;  %vm818_vm13 = vweird.f32 %v729_v56 }
 0x175   : > { %v804_v5 = vmul.f32 %v1291_v55, %v803_v57  ;;  %v662_v2 = vpop.xlane.xlu2 %661  ;;  %v801_v3 = vsel %vm800_vm8, %v1289_v24, %v797_v60  ;;  %v719_v57 = vld [vmem:[%s1653_s5 + $0x48] sm:$0xff] }
 0x176   : > { %v697_v4 = vmul.f32 %v675_v27, %v675_v27  ;;  %v686_v26 = vmul.f32 0.020408163, %v662_v2  ;;  %v1723_v6 = vmul.f32 %v801_v3, %v1719_v59 }
 0x177   : > { %v805_v62 = vmul.f32 0.5, %v804_v5 }
 0x178   : > { %v708_v39 = vsub.f32 %v686_v26, %v697_v4  ;;  %v859_v8 = vmul.f32 %v1723_v6, %v1681_v46 }
 0x179   : > { %v806_v9 = vsub.f32 1.5, %v805_v62 }
 0x17a   : > { %v1293_v13 = vpop.eup %1292  ;;  %v730_v15 = vadd.f32 1e-05, %v708_v39  ;;  %887 = vrot.lane.b32.xlu2 %v859_v8, %s1307_s6 }
 0x17b   : > { %v813_v16 = vmul.f32 %v1293_v13, %v729_v56  ;;  %v621_v17 = vpop.xlane.xlu1 %620  ;;  %v807_v19 = vmul.f32 %v1291_v55, %v806_v9  ;;  %vm819_vm12 = vweird.f32 %v1293_v13 }
 0x17c   : > { %1294 = vrsqrt.f32 %v730_v15  ;;  %v676_v22 = vmul.f32 0.020408163, %v621_v17  ;;  %vm820_vm14 = vmor %vm818_vm13, %vm819_vm12  ;;  %vm828_vm0 = vweird.f32 %v730_v15 }
 0x17d   : > { %v814_v23 = vmul.f32 %v1293_v13, %v813_v16  ;;  %v665_v20 = vpop.xlane.xlu0 %664  ;;  %v811_v24 = vsel %vm810_vm11, %v1291_v55, %v807_v19 }
 0x17e   : > { %v698_v46 = vmul.f32 %v676_v22, %v676_v22  ;;  %v687_v28 = vmul.f32 0.020408163, %v665_v20  ;;  %v849_v29 = vmul.f32 %v811_v24, %v1729_v18 }
 0x17f   : > { %v815_v30 = vmul.f32 0.5, %v814_v23 }
 0x180   : > { %v709_v36 = vsub.f32 %v687_v28, %v698_v46  ;;  %v860_v25 = vmul.f32 %v849_v29, %v1693_v7 }
 0x181   : > { %v816_v37 = vsub.f32 1.5, %v815_v30 }
 0x182   : > { %v1295_v38 = vpop.eup %1294  ;;  %v731_v40 = vadd.f32 1e-05, %v709_v36  ;;  %889 = vrot.lane.b32.xlu1 %v860_v25, %s1307_s6 }
 0x183   : > { %v823_v41 = vmul.f32 %v1295_v38, %v730_v15  ;;  %v817_v48 = vmul.f32 %v1293_v13, %v816_v37  ;;  %vm829_vm15 = vweird.f32 %v1295_v38 }
 0x184   : > { %1296 = vrsqrt.f32 %v731_v40  ;;  %vm830_vm1 = vmor %vm828_vm0, %vm829_vm15  ;;  %vm838_vm4 = vweird.f32 %v731_v40 }
 0x185   : > { %v824_v49 = vmul.f32 %v1295_v38, %v823_v41  ;;  %v821_v51 = vsel %vm820_vm14, %v1293_v13, %v817_v48 }
 0x186   : > { %v850_v43 = vmul.f32 %v821_v51, %v1735_v47 }
 0x187   : > { %v825_v52 = vmul.f32 0.5, %v824_v49 }
 0x188   : > { %v861_v7 = vmul.f32 %v850_v43, %v1702_v33  ;;  %v720_v33 = vld [vmem:[%s1653_s5 + $0x50] sm:$0xff] }
 0x189   : > { %v826_v55 = vsub.f32 1.5, %v825_v52 }
 0x18a   : > { %v1297_v61 = vpop.eup %1296  ;;  %891 = vrot.lane.b32.xlu0 %v861_v7, %s1307_s6 }
 0x18b   : > { %v833_v56 = vmul.f32 %v1297_v61, %v731_v40  ;;  %v827_v58 = vmul.f32 %v1295_v38, %v826_v55  ;;  %vm839_vm3 = vweird.f32 %v1297_v61 }
 0x18c   : > { %vm840_vm5 = vmor %vm838_vm4, %vm839_vm3 }
 0x18d   : > { %v834_v60 = vmul.f32 %v1297_v61, %v833_v56  ;;  %v831_v5 = vsel %vm830_vm1, %v1295_v38, %v827_v58 }
 0x18e   : > { %v851_v2 = vmul.f32 %v831_v5, %v719_v57 }
 0x18f   : > { %v835_v3 = vmul.f32 0.5, %v834_v60 }
 0x190   : > { %v862_v4 = vmul.f32 %v851_v2, %v675_v27  ;;  %v1308_v27 = vmov 1  }
 0x191   : > { %v836_v26 = vsub.f32 1.5, %v835_v3 }
 0x192   : > { %946 = vperm.xlu0 %1270, %v1711_v50   ;;  %893 = vrot.lane.b32.xlu2 %v862_v4, %s1307_s6 }
 0x193   : > { %v837_v62 = vmul.f32 %v1297_v61, %v836_v26 }
 0x195   : > { %v841_v39 = vsel %vm840_vm5, %v1297_v61, %v837_v62 }
 0x196   : > { %v852_v8 = vmul.f32 %v841_v39, %v720_v33 }
 0x198   : > { %v863_v9 = vmul.f32 %v852_v8, %v676_v22 }
 0x19a   : > { %961 = vperm.xlu0 %1270, %v850_v43   ;;  %951 = vperm.xlu2 %1271, %v1723_v6  }
 0x19b   : > { %895 = vrot.lane.b32.xlu1 %v863_v9, %s1307_s6 }
 0x1a2   : > { %966 = vperm.xlu2 %1271, %v851_v2   ;;  %1273 = vset.pattern.permute.xlu0 %v1308_v27 }
 0x1a3   : > { %956 = vperm.xlu1 %1272, %v849_v29  }
 0x1aa   : > { %1274 = vset.pattern.permute.xlu2 %v1308_v27 }
 0x1ab   : > { %971 = vperm.xlu1 %1272, %v852_v8  }
 0x1b0   : > { %v927_v50 = vpop.permute.xlu2 %926 }
 0x1b3   : > { %1275 = vset.pattern.permute.xlu1 %v1308_v27 }
 0x1b8   : > { %v878_v13 = vpop.permute.xlu2 %877 }
 0x1b9   : > { %v909_v15 = vsub.f32 %v1671_v14, %v878_v13 }
 0x1ba   : > { %v922_v22 = vpop.permute.xlu0 %921 }
 0x1bb   : > { %992 = vperm.xlu2 %1274, %v909_v15   ;;  %v974_v56 = vmul.f32 %v922_v22, %v1564_v35 }
 0x1bc   : > { %v876_v16 = vpop.permute.xlu1 %875 }
 0x1bd   : > { %v908_v17 = vsub.f32 %v1656_v44, %v876_v16 }
 0x1bf   : > { %987 = vperm.xlu0 %1273, %v908_v17  }
 0x1c2   : > { %v937_v19 = vpop.permute.xlu2 %936 }
 0x1c3   : > { %v977_v52 = vmul.f32 %v937_v19, %v1584_v0 }
 0x1ca   : > { %v882_v6 = vpop.permute.xlu2 %881 }
 0x1cb   : > { %v911_v23 = vsub.f32 %v1691_v63, %v882_v6 }
 0x1cd   : > { %1002 = vperm.xlu2 %1274, %v911_v23  }
 0x1d0   : > { %v932_v24 = vpop.permute.xlu1 %931 }
 0x1d2   : > { %v880_v20 = vpop.permute.xlu0 %879 }
 0x1d3   : > { %v910_v46 = vsub.f32 %v1679_v32, %v880_v20 }
 0x1d4   : > { %v888_v28 = vpop.permute.xlu2 %887 }
 0x1d5   : > { %v914_v29 = vsub.f32 %v1719_v59, %v888_v28  ;;  %997 = vperm.xlu1 %1275, %v910_v46  }
 0x1d7   : > { %1017 = vperm.xlu2 %1274, %v914_v29  }
 0x1dc   : > { %v942_v14 = vpop.permute.xlu1 %941 }
 0x1e4   : > { %v884_v30 = vpop.permute.xlu1 %883 }
 0x1e5   : > { %v912_v44 = vsub.f32 %v1696_v11, %v884_v30 }
 0x1e6   : > { %v886_v36 = vpop.permute.xlu0 %885 }
 0x1e7   : > { %v913_v25 = vsub.f32 %v1705_v34, %v886_v36  ;;  %1007 = vperm.xlu1 %1275, %v912_v44   ;;  %v975_v34 = vmul.f32 %v927_v50, %v1571_v45  ;;  %v978_v50 = vmul.f32 %v942_v14, %v1590_v10 }
 0x1e9   : > { %1012 = vperm.xlu0 %1273, %v913_v25  }
 0x1ec   : > { %v894_v63 = vpop.permute.xlu2 %893 }
 0x1ed   : > { %v917_v37 = vsub.f32 %v719_v57, %v894_v63 }
 0x1ef   : > { %1032 = vperm.xlu2 %1274, %v917_v37  }
 0x1f4   : > { %v890_v38 = vpop.permute.xlu1 %889  ;;  %v952_v41 = vpop.permute.xlu2 %951 }
 0x1f5   : > { %v915_v32 = vsub.f32 %v1729_v18, %v890_v38  ;;  %v980_v57 = vmul.f32 %v952_v41, %v1606_v31 }
 0x1f7   : > { %1022 = vperm.xlu1 %1275, %v915_v32  }
 0x1fc   : > { %v892_v59 = vpop.permute.xlu0 %891  ;;  %v967_v48 = vpop.permute.xlu2 %966 }
 0x1fd   : > { %v916_v40 = vsub.f32 %v1735_v47, %v892_v59  ;;  %v983_v35 = vmul.f32 %v967_v48, %v1627_v1 }
 0x1ff   : > { %1027 = vperm.xlu0 %1273, %v916_v40  }
 0x204   : > { %v947_v47 = vpop.permute.xlu0 %946 }
 0x20c   : > { %v962_v55 = vpop.permute.xlu0 %961 }
 0x20d   : > { %v896_v11 = vpop.permute.xlu1 %895  ;;  %v982_v10 = vmul.f32 %v962_v55, %v1620_v53 }
 0x20e   : > { %v918_v49 = vsub.f32 %v720_v33, %v896_v11  ;;  %v976_v33 = vmul.f32 %v932_v24, %v1577_v54  ;;  %v979_v54 = vmul.f32 %v947_v47, %v1599_v21 }
 0x210   : > { %1037 = vperm.xlu1 %1275, %v918_v49  }
 0x215   : > { %v993_v51 = vpop.permute.xlu2 %992  ;;  %v957_v0 = vpop.permute.xlu1 %956 }
 0x216   : > { %v1041_v43 = vadd.f32 %v993_v51, %v975_v34  ;;  %v981_v6 = vmul.f32 %v957_v0, %v1613_v42 }
 0x218   : > { %v1052_v18 = vmax.f32 %v1041_v43, 0.0 }
 0x21a   : > { %1063 = vst.msk [vmem:[%s1761_s9 + $0x8] sm:$0xff] %vm588_vm2, %v1052_v18 }
 0x21d   : > { %v972_v26 = vpop.permute.xlu1 %971 }
 0x21e   : > { %v984_v28 = vmul.f32 %v972_v26, %v1634_v12 }
 0x227   : > { %v1003_v7 = vpop.permute.xlu2 %1002 }
 0x228   : > { %v1043_v45 = vadd.f32 %v1003_v7, %v977_v52 }
 0x22a   : > { %v1054_v61 = vmax.f32 %v1043_v45, 0.0 }
 0x22c   : > { %1065 = vst.msk [vmem:[%s1761_s9 + $0x18] sm:$0xff] %vm588_vm2, %v1054_v61 }
 0x231   : > { %v1018_v58 = vpop.permute.xlu2 %1017  ;;  %v988_v60 = vpop.permute.xlu0 %987 }
 0x232   : > { %v1046_v5 = vadd.f32 %v1018_v58, %v980_v57  ;;  %v1040_v2 = vadd.f32 %v988_v60, %v974_v56 }
 0x234   : > { %v1057_v3 = vmax.f32 %v1046_v5, 0.0  ;;  %v1051_v4 = vmax.f32 %v1040_v2, 0.0 }
 0x236   : > { %1068 = vst.msk [vmem:[%s1761_s9 + $0x30] sm:$0xff] %vm588_vm2, %v1057_v3 }
 0x237   : > { %1062 = vst.msk [vmem:[%s1761_s9] sm:$0xff] %vm588_vm2, %v1051_v4 }
 0x247   : > { %v998_v31 = vpop.permute.xlu1 %997 }
 0x248   : > { %v1042_v62 = vadd.f32 %v998_v31, %v976_v33 }
 0x249   : > { %v1033_v39 = vpop.permute.xlu2 %1032 }
 0x24a   : > { %v1049_v8 = vadd.f32 %v1033_v39, %v983_v35  ;;  %v1053_v9 = vmax.f32 %v1042_v62, 0.0 }
 0x24c   : > { %v1060_v27 = vmax.f32 %v1049_v8, 0.0  ;;  %1064 = vst.msk [vmem:[%s1761_s9 + $0x10] sm:$0xff] %vm588_vm2, %v1053_v9 }
 0x24e   : > { %1071 = vst.msk [vmem:[%s1761_s9 + $0x48] sm:$0xff] %vm588_vm2, %v1060_v27 }
 0x259   : > { %v1008_v13 = vpop.permute.xlu1 %1007 }
 0x25a   : > { %v1044_v15 = vadd.f32 %v1008_v13, %v978_v50 }
 0x25b   : > { %v1013_v1 = vpop.permute.xlu0 %1012 }
 0x25c   : > { %v1055_v16 = vmax.f32 %v1044_v15, 0.0  ;;  %v1045_v17 = vadd.f32 %v1013_v1, %v979_v54 }
 0x25e   : > { %1066 = vst.msk [vmem:[%s1761_s9 + $0x20] sm:$0xff] %vm588_vm2, %v1055_v16  ;;  %v1056_v19 = vmax.f32 %v1045_v17, 0.0 }
 0x260   : > { %1067 = vst.msk [vmem:[%s1761_s9 + $0x28] sm:$0xff] %vm588_vm2, %v1056_v19 }
 0x269   : > { %v1023_v22 = vpop.permute.xlu1 %1022 }
 0x26a   : > { %v1047_v23 = vadd.f32 %v1023_v22, %v981_v6 }
 0x26c   : > { %v1058_v20 = vmax.f32 %v1047_v23, 0.0 }
 0x26e   : > { %1069 = vst.msk [vmem:[%s1761_s9 + $0x38] sm:$0xff] %vm588_vm2, %v1058_v20 }
 0x271   : > { %v1028_v21 = vpop.permute.xlu0 %1027 }
 0x272   : > { %v1048_v24 = vadd.f32 %v1028_v21, %v982_v10 }
 0x274   : > { %v1059_v46 = vmax.f32 %v1048_v24, 0.0 }
 0x276   : > { %1070 = vst.msk [vmem:[%s1761_s9 + $0x40] sm:$0xff] %vm588_vm2, %v1059_v46 }
 0x282   : > { %v1038_v29 = vpop.permute.xlu1 %1037 }
 0x283   : > { %v1050_v14 = vadd.f32 %v1038_v29, %v984_v28 }
 0x285   : > { %v1061_v30 = vmax.f32 %v1050_v14, 0.0 }
 0x287   : > { %1072 = vst.msk [vmem:[%s1761_s9 + $0x50] sm:$0xff] %vm588_vm2, %v1061_v30 }
 0x288 PF: > { %s13_s12 = sadd.s32 1, %s1304_s12  }
 0x289   : > { %p10_p4 = scmp.ge.s32.totalorder %s13_s12, 7  }
 0x28b   :  { %12 = sbr.rel (!%p10_p4) target bundleno = 1 (0x1), region = 65 }

</bundles_post_ra>
